<compile_context>
chip_gen: v7x
topology: tpu7x:2x2x1
jax: 0.10.0
libtpu: 0.0.40
codegen_flags: <defaults>
</compile_context>

<pallas_src>
import functools

import jax
import jax.numpy as jnp
from jax import lax
from jax.experimental import pallas as pl
from jax.experimental.pallas import tpu as pltpu

_LANES = 128
_SUBLANES = 8


def _round_up(n: int, m: int) -> int:
    return ((n + m - 1) // m) * m


def _mix32(h):
    """lowbias32 integer mixer: cheap uniform u32 hash using only standard lax ops."""
    h = h ^ lax.shift_right_logical(h, jnp.uint32(16))
    h = h * jnp.uint32(0x7FEB352D)
    h = h ^ lax.shift_right_logical(h, jnp.uint32(15))
    h = h * jnp.uint32(0x846CA68B)
    h = h ^ lax.shift_right_logical(h, jnp.uint32(16))
    return h


def _mlp_kernel(seed_ref, x_ref, w_ref, b_ref, o_ref, act_ref, *,
                num_layers, keep_prob, apply_dropout, tile_b, d_pad):
    # Activation stays resident in VMEM scratch across all layers.
    act_ref[...] = x_ref[...].astype(jnp.float32)

    if apply_dropout:
        row = lax.broadcasted_iota(jnp.int32, (tile_b, d_pad), 0)
        col = lax.broadcasted_iota(jnp.int32, (tile_b, d_pad), 1)
        g_row = row + pl.program_id(0) * tile_b        # global row -> unique mask per batch tile
        elem = g_row.astype(jnp.uint32) * jnp.uint32(d_pad) + col.astype(jnp.uint32)
        seed_u = seed_ref[0].astype(jnp.uint32) * jnp.uint32(0x9E3779B1)
        thresh = jnp.uint32(min(int(round(keep_prob * (2 ** 32))), 2 ** 32 - 1))
        scale = jnp.float32(1.0 / keep_prob)

    for layer in range(num_layers):                    # static unroll: num_layers is small
        # bias folded into the same expression (single VPU add after the MXU dot)
        y = jnp.dot(act_ref[...], w_ref[layer],
                    preferred_element_type=jnp.float32) + b_ref[layer]
        y = jnp.maximum(y, 0.0)                        # ReLU
        if apply_dropout:
            salt = jnp.uint32((0x85EBCA6B * (layer + 1)) & 0xFFFFFFFF)
            keep = (_mix32(elem ^ (seed_u + salt)) < thresh).astype(jnp.float32)
            y = y * (keep * scale)                     # multiply, no select
        act_ref[...] = y

    o_ref[...] = act_ref[...].astype(o_ref.dtype)


def mlp_relu_dropout(x, w_stack, b_stack, seed, *, keep_prob=0.5, apply_dropout=True):
    """dropout(relu(x @ W_l + b_l)) chained over L layers in one fused pallas_call.

    x        : [B, Dp]      (feature dim already zero-padded to a multiple of 128)
    w_stack  : [L, Dp, Dp]  (zero-padded per-layer weights, y = x @ W)
    b_stack  : [L, 1, Dp]   (zero-padded per-layer biases)
    """
    b_rows, d_pad = x.shape
    num_layers = w_stack.shape[0]
    assert w_stack.shape == (num_layers, d_pad, d_pad)
    assert b_stack.shape == (num_layers, 1, d_pad)

    # Batch tiling: large tiles at scale, sublane-rounded at toy sizes.
    tile_b = 512 if b_rows >= 512 else _round_up(max(b_rows, 1), _SUBLANES)
    b_pad = _round_up(b_rows, tile_b)
    if b_pad != b_rows:
        x = jnp.pad(x, ((0, b_pad - b_rows), (0, 0)))

    kernel = functools.partial(
        _mlp_kernel,
        num_layers=num_layers,
        keep_prob=float(keep_prob),
        apply_dropout=bool(apply_dropout) and keep_prob < 1.0,
        tile_b=tile_b,
        d_pad=d_pad)

    seed_arr = jnp.asarray([seed], dtype=jnp.int32)

    out = pl.pallas_call(
        kernel,
        out_shape=jax.ShapeDtypeStruct((b_pad, d_pad), x.dtype),
        grid_spec=pltpu.PrefetchScalarGridSpec(
            num_scalar_prefetch=1,                      # seed lands in SMEM
            grid=(b_pad // tile_b,),
            in_specs=[
                pl.BlockSpec((tile_b, d_pad), lambda i, _seed: (i, 0)),        # x tile
                pl.BlockSpec((num_layers, d_pad, d_pad),
                             lambda i, _seed: (0, 0, 0)),                      # all weights, resident
                pl.BlockSpec((num_layers, 1, d_pad),
                             lambda i, _seed: (0, 0, 0)),                      # all biases, resident
            ],
            out_specs=pl.BlockSpec((tile_b, d_pad), lambda i, _seed: (i, 0)),
            scratch_shapes=[pltpu.VMEM((tile_b, d_pad), jnp.float32)],
        ),
        compiler_params=pltpu.CompilerParams(
            dimension_semantics=("parallel",)),         # batch tiles split across TCs (v7x)
    )(seed_arr, x, w_stack, b_stack)
    return out[:b_rows]


class ReLUWithDropoutPallas:
    """JAX/Pallas port of ReLUWithDropout (single fused kernel forward)."""

    def __init__(self, input_dim, mem_dim, output_dim, num_layers, dropout_rate, key):
        self.input_dim = input_dim
        self.mem_dim = mem_dim
        self.output_dim = output_dim
        self.num_layers = num_layers
        self.dropout_rate = dropout_rate        # stored but (like torch) unused: p=0.5
        self.keep_prob = 0.5                    # nn.Dropout() default

        if num_layers == 1:
            dims = [(input_dim, output_dim)]
        else:
            dims = ([(input_dim, mem_dim)]
                    + [(mem_dim, mem_dim) for _ in range(num_layers - 1)]
                    + [(mem_dim, output_dim)])  # final linear exists but is never applied

        applied = dims[:num_layers]             # zip() truncation in the torch forward
        self.out_width = applied[-1][1]
        self.d_pad = _round_up(max(max(fi, fo) for fi, fo in applied), _LANES)

        # Raw (unpadded) params, torch nn.Linear default init.
        self.weights_raw, self.biases_raw = [], []
        for fan_in, fan_out in dims:
            key, kw, kb = jax.random.split(key, 3)
            bound = 1.0 / (fan_in ** 0.5)
            w = jax.random.uniform(kw, (fan_in, fan_out), jnp.float32, -bound, bound)
            b = jax.random.uniform(kb, (fan_out,), jnp.float32, -bound, bound)
            self.weights_raw.append(w)
            self.biases_raw.append(b)

        # Lane-dense zero-padded stacks for the fused kernel (applied layers only).
        ws, bs = [], []
        for (fan_in, fan_out), w, b in zip(applied, self.weights_raw, self.biases_raw):
            ws.append(jnp.zeros((self.d_pad, self.d_pad), jnp.float32)
                      .at[:fan_in, :fan_out].set(w))
            bs.append(jnp.zeros((1, self.d_pad), jnp.float32)
                      .at[0, :fan_out].set(b))
        self.w_stack = jnp.stack(ws)            # [L, d_pad, d_pad]
        self.b_stack = jnp.stack(bs)            # [L, 1, d_pad]
        # TODO(synk): for production sizes, store w_stack/b_stack in bf16 (f32 accumulate)
        # to exploit the bf16-native MXU on v5e/v6e/v7x.

    def __call__(self, x, seed=0, training=True):
        batch, din = x.shape
        assert din == self.input_dim
        x_pad = jnp.zeros((batch, self.d_pad), x.dtype).at[:, :din].set(x)
        out = mlp_relu_dropout(x_pad, self.w_stack, self.b_stack, seed,
                               keep_prob=self.keep_prob, apply_dropout=training)
        # TODO(synk): the original torch forward returns None (bug); we return the
        # activations of the last applied layer instead.
        return out[:, :self.out_width]


def _reference_no_dropout(model, x):
    h = x
    for i in range(model.num_layers):
        h = jnp.maximum(
            jnp.dot(h, model.weights_raw[i], precision=lax.Precision.HIGHEST)
            + model.biases_raw[i], 0.0)
    return h


if __name__ == "__main__":
    key = jax.random.PRNGKey(0)
    key, kx, kp = jax.random.split(key, 3)

    batch = 8
    input_dim, mem_dim, output_dim, num_layers = 32, 32, 16, 3
    dropout_rate = 0.1   # ignored by the module (nn.Dropout() default p=0.5), kept for parity

    model = ReLUWithDropoutPallas(input_dim, mem_dim, output_dim, num_layers,
                                  dropout_rate, kp)
    x = jax.random.normal(kx, (batch, input_dim), jnp.float32)

    # Eval path (dropout off): must match a plain-JAX reference of the applied layers.
    out_eval = jax.block_until_ready(model(x, seed=0, training=False))
    ref_eval = _reference_no_dropout(model, x)
    assert out_eval.shape == ref_eval.shape == (batch, mem_dim)
    assert bool(jnp.allclose(out_eval, ref_eval, rtol=1e-2, atol=1e-2))

    # Training path (fused in-kernel dropout, p=0.5).
    out = jax.block_until_ready(model(x, seed=1234, training=True))
    assert out.shape == (batch, mem_dim)          # num_layers>1 -> last applied layer is mem_dim wide
    assert bool(jnp.all(jnp.isfinite(out)))
    assert bool(jnp.all(out >= 0.0))              # ReLU + non-negative dropout scaling
    print("KERNEL_OK")
</pallas_src>

<mosaic_0001>
module attributes {stable_mosaic.version = 11 : i64} {
  func.func @_mlp_kernel(%arg0: i32, %arg1: memref<1xi32, #tpu.memory_space<smem>>, %arg2: memref<8x128xf32, #tpu.memory_space<vmem>>, %arg3: memref<3x128x128xf32, #tpu.memory_space<vmem>>, %arg4: memref<3x1x128xf32, #tpu.memory_space<vmem>>, %arg5: memref<8x128xf32, #tpu.memory_space<vmem>>, %arg6: memref<8x128xf32, #tpu.memory_space<vmem>>) attributes {dimension_semantics = [#tpu.dimension_semantics<parallel>], iteration_bounds = array<i64: 1>, scalar_prefetch = 1 : i64, scratch_operands = 1 : i64, tpu.core_type = #tpu.core_type<tc>, window_params = [{transform_indices = @transform_0, window_bounds = array<i64: 8, 128>}, {pipeline_mode = #tpu.pipeline_mode<synchronous>, transform_indices = @transform_1, window_bounds = array<i64: 3, 128, 128>}, {pipeline_mode = #tpu.pipeline_mode<synchronous>, transform_indices = @transform_2, window_bounds = array<i64: 3, 1, 128>}, {transform_indices = @transform_3, window_bounds = array<i64: 8, 128>}]} {
    %c0 = arith.constant 0 : index
    %c0_0 = arith.constant 0 : index
    %0 = vector.load %arg2[%c0, %c0_0] : memref<8x128xf32, #tpu.memory_space<vmem>>, vector<8x128xf32>
    %c0_1 = arith.constant 0 : index
    %c0_2 = arith.constant 0 : index
    %1 = vector.load %arg6[%c0_1, %c0_2] : memref<8x128xf32, #tpu.memory_space<vmem>>, vector<8x128xf32>
    tpu.vector_store %arg6[%c0_1, %c0_2], %0 {strides = array<i32>} : memref<8x128xf32, #tpu.memory_space<vmem>>, vector<8x128xf32>,
    %c0_3 = arith.constant 0 : index
    %c0_4 = arith.constant 0 : index
    %2 = vector.load %arg6[%c0_3, %c0_4] : memref<8x128xf32, #tpu.memory_space<vmem>>, vector<8x128xf32>
    %c0_5 = arith.constant 0 : index
    %c0_6 = arith.constant 0 : index
    %c0_7 = arith.constant 0 : index
    %3 = vector.load %arg3[%c0_5, %c0_6, %c0_7] : memref<3x128x128xf32, #tpu.memory_space<vmem>>, vector<1x128x128xf32>
    %4 = vector.shape_cast %3 : vector<1x128x128xf32> to vector<128x128xf32>
    %cst = arith.constant dense<0.000000e+00> : vector<8x128xf32>
    %5 = tpu.matmul %2, %4, %cst {dimension_numbers = #tpu.dot_dimension_numbers<[1], [0], [0], [1], [0, 0, 1, 1], [], []>} : vector<8x128xf32>, vector<128x128xf32>, vector<8x128xf32> -> vector<8x128xf32>
    %c0_8 = arith.constant 0 : index
    %c0_9 = arith.constant 0 : index
    %c0_10 = arith.constant 0 : index
    %6 = vector.load %arg4[%c0_8, %c0_9, %c0_10] : memref<3x1x128xf32, #tpu.memory_space<vmem>>, vector<1x1x128xf32>
    %7 = vector.shape_cast %6 : vector<1x1x128xf32> to vector<1x128xf32>
    %8 = vector.broadcast %7 : vector<1x128xf32> to vector<8x128xf32>
    %9 = arith.addf %5, %8 : vector<8x128xf32>
    %cst_11 = arith.constant 0.000000e+00 : f32
    %10 = vector.broadcast %cst_11 : f32 to vector<8x128xf32>
    %11 = arith.maximumf %9, %10 : vector<8x128xf32>
    %c0_12 = arith.constant 0 : index
    %c0_13 = arith.constant 0 : index
    %12 = vector.load %arg6[%c0_12, %c0_13] : memref<8x128xf32, #tpu.memory_space<vmem>>, vector<8x128xf32>
    tpu.vector_store %arg6[%c0_12, %c0_13], %11 {strides = array<i32>} : memref<8x128xf32, #tpu.memory_space<vmem>>, vector<8x128xf32>,
    %c0_14 = arith.constant 0 : index
    %c0_15 = arith.constant 0 : index
    %13 = vector.load %arg6[%c0_14, %c0_15] : memref<8x128xf32, #tpu.memory_space<vmem>>, vector<8x128xf32>
    %c1 = arith.constant 1 : index
    %c0_16 = arith.constant 0 : index
    %c0_17 = arith.constant 0 : index
    %14 = vector.load %arg3[%c1, %c0_16, %c0_17] : memref<3x128x128xf32, #tpu.memory_space<vmem>>, vector<1x128x128xf32>
    %15 = vector.shape_cast %14 : vector<1x128x128xf32> to vector<128x128xf32>
    %cst_18 = arith.constant dense<0.000000e+00> : vector<8x128xf32>
    %16 = tpu.matmul %13, %15, %cst_18 {dimension_numbers = #tpu.dot_dimension_numbers<[1], [0], [0], [1], [0, 0, 1, 1], [], []>} : vector<8x128xf32>, vector<128x128xf32>, vector<8x128xf32> -> vector<8x128xf32>
    %c1_19 = arith.constant 1 : index
    %c0_20 = arith.constant 0 : index
    %c0_21 = arith.constant 0 : index
    %17 = vector.load %arg4[%c1_19, %c0_20, %c0_21] : memref<3x1x128xf32, #tpu.memory_space<vmem>>, vector<1x1x128xf32>
    %18 = vector.shape_cast %17 : vector<1x1x128xf32> to vector<1x128xf32>
    %19 = vector.broadcast %18 : vector<1x128xf32> to vector<8x128xf32>
    %20 = arith.addf %16, %19 : vector<8x128xf32>
    %cst_22 = arith.constant 0.000000e+00 : f32
    %21 = vector.broadcast %cst_22 : f32 to vector<8x128xf32>
    %22 = arith.maximumf %20, %21 : vector<8x128xf32>
    %c0_23 = arith.constant 0 : index
    %c0_24 = arith.constant 0 : index
    %23 = vector.load %arg6[%c0_23, %c0_24] : memref<8x128xf32, #tpu.memory_space<vmem>>, vector<8x128xf32>
    tpu.vector_store %arg6[%c0_23, %c0_24], %22 {strides = array<i32>} : memref<8x128xf32, #tpu.memory_space<vmem>>, vector<8x128xf32>,
    %c0_25 = arith.constant 0 : index
    %c0_26 = arith.constant 0 : index
    %24 = vector.load %arg6[%c0_25, %c0_26] : memref<8x128xf32, #tpu.memory_space<vmem>>, vector<8x128xf32>
    %c2 = arith.constant 2 : index
    %c0_27 = arith.constant 0 : index
    %c0_28 = arith.constant 0 : index
    %25 = vector.load %arg3[%c2, %c0_27, %c0_28] : memref<3x128x128xf32, #tpu.memory_space<vmem>>, vector<1x128x128xf32>
    %26 = vector.shape_cast %25 : vector<1x128x128xf32> to vector<128x128xf32>
    %cst_29 = arith.constant dense<0.000000e+00> : vector<8x128xf32>
    %27 = tpu.matmul %24, %26, %cst_29 {dimension_numbers = #tpu.dot_dimension_numbers<[1], [0], [0], [1], [0, 0, 1, 1], [], []>} : vector<8x128xf32>, vector<128x128xf32>, vector<8x128xf32> -> vector<8x128xf32>
    %c2_30 = arith.constant 2 : index
    %c0_31 = arith.constant 0 : index
    %c0_32 = arith.constant 0 : index
    %28 = vector.load %arg4[%c2_30, %c0_31, %c0_32] : memref<3x1x128xf32, #tpu.memory_space<vmem>>, vector<1x1x128xf32>
    %29 = vector.shape_cast %28 : vector<1x1x128xf32> to vector<1x128xf32>
    %30 = vector.broadcast %29 : vector<1x128xf32> to vector<8x128xf32>
    %31 = arith.addf %27, %30 : vector<8x128xf32>
    %cst_33 = arith.constant 0.000000e+00 : f32
    %32 = vector.broadcast %cst_33 : f32 to vector<8x128xf32>
    %33 = arith.maximumf %31, %32 : vector<8x128xf32>
    %c0_34 = arith.constant 0 : index
    %c0_35 = arith.constant 0 : index
    %34 = vector.load %arg6[%c0_34, %c0_35] : memref<8x128xf32, #tpu.memory_space<vmem>>, vector<8x128xf32>
    tpu.vector_store %arg6[%c0_34, %c0_35], %33 {strides = array<i32>} : memref<8x128xf32, #tpu.memory_space<vmem>>, vector<8x128xf32>,
    %c0_36 = arith.constant 0 : index
    %c0_37 = arith.constant 0 : index
    %35 = vector.load %arg6[%c0_36, %c0_37] : memref<8x128xf32, #tpu.memory_space<vmem>>, vector<8x128xf32>
    %c0_38 = arith.constant 0 : index
    %c0_39 = arith.constant 0 : index
    %36 = vector.load %arg5[%c0_38, %c0_39] : memref<8x128xf32, #tpu.memory_space<vmem>>, vector<8x128xf32>
    tpu.vector_store %arg5[%c0_38, %c0_39], %35 {strides = array<i32>} : memref<8x128xf32, #tpu.memory_space<vmem>>, vector<8x128xf32>,
    return
  }
  func.func @transform_0(%arg0: i32, %arg1: memref<1xi32, #tpu.memory_space<smem>>) -> (i32, i32) {
    %c0_i32 = arith.constant 0 : i32
    %c0_i32_0 = arith.constant 0 : i32
    return %arg0, %c0_i32 : i32, i32
  }
  func.func @transform_1(%arg0: i32, %arg1: memref<1xi32, #tpu.memory_space<smem>>) -> (i32, i32, i32) {
    %c0_i32 = arith.constant 0 : i32
    %c0_i32_0 = arith.constant 0 : i32
    %c0_i32_1 = arith.constant 0 : i32
    %c0_i32_2 = arith.constant 0 : i32
    return %c0_i32, %c0_i32_0, %c0_i32_1 : i32, i32, i32
  }
  func.func @transform_2(%arg0: i32, %arg1: memref<1xi32, #tpu.memory_space<smem>>) -> (i32, i32, i32) {
    %c0_i32 = arith.constant 0 : i32
    %c0_i32_0 = arith.constant 0 : i32
    %c0_i32_1 = arith.constant 0 : i32
    %c0_i32_2 = arith.constant 0 : i32
    return %c0_i32, %c0_i32_0, %c0_i32_1 : i32, i32, i32
  }
  func.func @transform_3(%arg0: i32, %arg1: memref<1xi32, #tpu.memory_space<smem>>) -> (i32, i32) {
    %c0_i32 = arith.constant 0 : i32
    %c0_i32_0 = arith.constant 0 : i32
    return %arg0, %c0_i32 : i32, i32
  }
}

</mosaic_0001>

<bundles_post_ra>
// kernel: tpu_custom_call.1
= control target key start
LH: loop header
LB: loop body
LE: loop exit
PB: predicated region body
PF: predicated region fallthrough
CT: control target
= control target key end

     0   :  { %10 = vsyncpa [#allocation6], 0  ;;  %s783_s0 = inlined_call_operand.<no memory space> [shape: s32[1], index: 0, kind: input, shape index: {}]   ;;  %s784_s1 = inlined_call_operand.hbm [shape: f32[8,128], index: 1, kind: input, shape index: {}]   ;;  %s785_s2 = inlined_call_operand.hbm [shape: f32[3,128,128], index: 2, kind: input, shape index: {}]   ;;  %s786_s3 = inlined_call_operand.vmem [shape: f32[3,1,128], index: 3, kind: input, shape index: {}]   ;;  %s787_s4 = inlined_call_operand.hbm [shape: f32[8,128], index: 4, kind: output, shape index: {}]  }
   0x1   :  { %11 = vsyncpa [#allocation9], 0 }
   0x2   :  { %12 = vsyncpa [#allocation7], 0  ;;  %s668_s15 = smov [#allocation5]   ;;  %s669_s17 = smov [#allocation8]  }
   0x3   :  { %s19_s16 = sshll.u32 %s668_s15, 4  ;;  %s28_s18 = sshll.u32 %s669_s17, 4  ;;  %s20_s16 = int_to_ptr.vmem [resolvable:$true] %s19_s16  ;;  %s701_s18 = int_to_ptr.vmem [resolvable:$true] %s28_s18 }
   0x4   :  { %s596_s20 = scalar_lea.hbm %s784_s1, 128 }
   0x5   :  { %p597_p0 = scmp.ne.s32.totalorder %s784_s1, %s596_s20  ;;  %p600_p1 = scmp.lt.u32.totalorder %s596_s20, %s784_s1 }
   0x7   :  { %p602_p2 = pnand %p600_p1, %p597_p0 }
   0x9   :  { %605 = shalt.err (!%p602_p2)
}
   0xa   :  { %s606_s25 = scalar_lea.vmem %s20_s16, 128  ;;  %p611_p4 = scmp.lt.s32.totalorder %s20_s16, %s20_s16 }
   0xb   :  { %p607_p3 = scmp.ne.s32.totalorder %s20_s16, %s606_s25  ;;  %p612_p5 = scmp.lt.s32.totalorder %s606_s25, %s606_s25 }
   0xd   :  { %p613_p6 = por %p612_p5, %p611_p4 }
   0xf   :  { %p614_p7 = pnand %p613_p6, %p607_p3 }
  0x11   :  { %617 = shalt.err (!%p614_p7)
}
  0x12   :  { %22 = dma.hbm_to_vmem [thread:$0]  %s784_s1, 128, %s20_s16, [#allocation6]  }
  0x13   :  { %s618_s30 = scalar_lea.hbm %s785_s2, 6144 }
  0x14   :  { %p619_p8 = scmp.ne.s32.totalorder %s785_s2, %s618_s30  ;;  %p622_p9 = scmp.lt.u32.totalorder %s618_s30, %s785_s2 }
  0x16   :  { %p624_p10 = pnand %p622_p9, %p619_p8 }
  0x18   :  { %627 = shalt.err (!%p624_p10)
}
  0x19   :  { %s628_s9 = scalar_lea.vmem %s701_s18, 6144  ;;  %p633_p12 = scmp.lt.s32.totalorder %s701_s18, %s701_s18 }
  0x1a   :  { %p629_p11 = scmp.ne.s32.totalorder %s701_s18, %s628_s9  ;;  %p634_p13 = scmp.lt.s32.totalorder %s628_s9, %s628_s9 }
  0x1c   :  { %p635_p0 = por %p634_p13, %p633_p12 }
  0x1e   :  { %p636_p1 = pnand %p635_p0, %p629_p11 }
  0x20   :  { %639 = shalt.err (!%p636_p1)
}
  0x21   :  { %s670_s1 = smov 128   ;;  %s671_s10 = smov 8  }
  0x22   :  { %34 = dma.hbm_to_vmem [thread:$0]  %s785_s2, 6144, %s701_s18, [#allocation9], %s670_s1, %s670_s1, %s671_s10  }
  0x23   :  { %662 = dma.done.wait [#allocation6], 128  }
  0x24   :  { %663 = vsyncadd [#allocation6], 4294967168 }
  0x25   :  { %664 = dma.done.wait [#allocation9], 6144  }
  0x26   :  { %665 = vsyncadd [#allocation9], 4294961152  ;;  %v672_v0 = vmov 0.0|0.0   ;;  %vm673_vm0 = vmmov 0   ;;  %v674_v1 = vmov 0.0   ;;  %v46_v2 = vld [vmem:[#allocation8] sm:$0xff] }
  0x27   :  { %516 = vmatprep.subr.bf16.mxu0 %v672_v0  ;;  %443 = vmatprep.mubr.msk.f32.mxu0 %vm673_vm0, %v674_v1  ;;  %v47_v3 = vld [vmem:[#allocation8 + $0x8] sm:$0xff]  ;;  %v48_v4 = vld [vmem:[#allocation8 + $0x10] sm:$0xff]  ;;  %v49_v6 = vld [vmem:[#allocation8 + $0x18] sm:$0xff]  ;;  %s675_s18 = smov [#allocation10]  }
  0x28   :  { %540 = vmatprep.subr.bf16.mxu1 %v672_v0  ;;  %478 = vmatprep.mubr.msk.f32.mxu1 %vm673_vm0, %v674_v1  ;;  %v517_v5 = vpack.c.bf16 %v47_v3, %v46_v2  ;;  %v520_v7 = vpack.c.bf16 %v49_v6, %v48_v4  ;;  %v50_v8 = vld [vmem:[#allocation8 + $0x20] sm:$0xff]  ;;  %v51_v9 = vld [vmem:[#allocation8 + $0x28] sm:$0xff]  ;;  %v145_v12 = vld [vmem:[#allocation8 + $0x90] sm:$0xff]  ;;  %s345_s0 = sshll.u32 %s675_s18, 4  ;;  %s346_s0 = int_to_ptr.vmem [resolvable:$true] %s345_s0 }
  0x29   :  { %v143_v10 = vld [vmem:[#allocation8 + $0x80] sm:$0xff]  ;;  %v144_v11 = vld [vmem:[#allocation8 + $0x88] sm:$0xff]  ;;  %v146_v13 = vld [vmem:[#allocation8 + $0x98] sm:$0xff]  ;;  %v523_v14 = vpack.c.bf16 %v51_v9, %v50_v8  ;;  %s640_s19 = scalar_lea.vmem %s346_s0, 128  ;;  %p645_p3 = scmp.lt.s32.totalorder %s346_s0, %s346_s0 }
  0x2a   :  { %518 = vmatpush3.bf16.msra.mxu0 %v517_v5  ;;  %v541_v15 = vpack.c.bf16 %v144_v11, %v143_v10  ;;  %v52_v16 = vld [vmem:[#allocation8 + $0x30] sm:$0xff]  ;;  %v53_v17 = vld [vmem:[#allocation8 + $0x38] sm:$0xff]  ;;  %v544_v18 = vpack.c.bf16 %v146_v13, %v145_v12  ;;  %v147_v19 = vld [vmem:[#allocation8 + $0xa0] sm:$0xff]  ;;  %p641_p2 = scmp.ne.s32.totalorder %s346_s0, %s640_s19  ;;  %p646_p4 = scmp.lt.s32.totalorder %s640_s19, %s640_s19 }
  0x2b   :  { %519 = vmatprep.subr.bf16.mxu0 %v672_v0  ;;  %v148_v20 = vld [vmem:[#allocation8 + $0xa8] sm:$0xff]  ;;  %v526_v21 = vpack.c.bf16 %v53_v17, %v52_v16  ;;  %v54_v22 = vld [vmem:[#allocation8 + $0x40] sm:$0xff]  ;;  %v149_v25 = vld [vmem:[#allocation8 + $0xb0] sm:$0xff] }
  0x2c   :  { %542 = vmatpush3.bf16.msra.mxu1 %v541_v15  ;;  %v55_v23 = vld [vmem:[#allocation8 + $0x48] sm:$0xff]  ;;  %v547_v24 = vpack.c.bf16 %v148_v20, %v147_v19  ;;  %v150_v26 = vld [vmem:[#allocation8 + $0xb8] sm:$0xff]  ;;  %v56_v28 = vld [vmem:[#allocation8 + $0x50] sm:$0xff]  ;;  %p647_p5 = por %p646_p4, %p645_p3 }
  0x2d   :  { %543 = vmatprep.subr.bf16.mxu1 %v672_v0  ;;  %v529_v27 = vpack.c.bf16 %v55_v23, %v54_v22  ;;  %v57_v29 = vld [vmem:[#allocation8 + $0x58] sm:$0xff]  ;;  %v550_v30 = vpack.c.bf16 %v150_v26, %v149_v25  ;;  %v151_v31 = vld [vmem:[#allocation8 + $0xc0] sm:$0xff]  ;;  %v152_v32 = vld [vmem:[#allocation8 + $0xc8] sm:$0xff] }
  0x2e   :  { %521 = vmatpush3.bf16.msra.mxu0 %v520_v7  ;;  %v532_v33 = vpack.c.bf16 %v57_v29, %v56_v28  ;;  %v58_v34 = vld [vmem:[#allocation8 + $0x60] sm:$0xff]  ;;  %v59_v35 = vld [vmem:[#allocation8 + $0x68] sm:$0xff]  ;;  %v553_v36 = vpack.c.bf16 %v152_v32, %v151_v31  ;;  %v153_v37 = vld [vmem:[#allocation8 + $0xd0] sm:$0xff]  ;;  %p648_p6 = pnand %p647_p5, %p641_p2 }
  0x2f   :  { %522 = vmatprep.subr.bf16.mxu0 %v672_v0  ;;  %v154_v38 = vld [vmem:[#allocation8 + $0xd8] sm:$0xff]  ;;  %v535_v39 = vpack.c.bf16 %v59_v35, %v58_v34  ;;  %v60_v40 = vld [vmem:[#allocation8 + $0x70] sm:$0xff]  ;;  %v155_v43 = vld [vmem:[#allocation8 + $0xe0] sm:$0xff] }
  0x30   :  { %545 = vmatpush3.bf16.msra.mxu1 %v544_v18  ;;  %v61_v41 = vld [vmem:[#allocation8 + $0x78] sm:$0xff]  ;;  %v556_v42 = vpack.c.bf16 %v154_v38, %v153_v37  ;;  %v156_v44 = vld [vmem:[#allocation8 + $0xe8] sm:$0xff]  ;;  %v157_v48 = vld [vmem:[#allocation8 + $0xf0] sm:$0xff] }
  0x31   :  { %546 = vmatprep.subr.bf16.mxu1 %v672_v0  ;;  %v538_v45 = vpack.c.bf16 %v61_v41, %v60_v40  ;;  %v559_v46 = vpack.c.bf16 %v156_v44, %v155_v43  ;;  %v43_v47 = vld [vmem:[#allocation5] sm:$0xff]  ;;  %v241_v51 = vld [vmem:[#allocation8 + $0x100] sm:$0xff]  ;;  %v242_v52 = vld [vmem:[#allocation8 + $0x108] sm:$0xff] }
  0x32   :  { %524 = vmatpush3.bf16.msra.mxu0 %v523_v14  ;;  %v158_v49 = vld [vmem:[#allocation8 + $0xf8] sm:$0xff]  ;;  %v243_v53 = vld [vmem:[#allocation8 + $0x110] sm:$0xff]  ;;  %v565_v54 = vpack.c.bf16 %v242_v52, %v241_v51  ;;  %v245_v57 = vld [vmem:[#allocation8 + $0x120] sm:$0xff] }
  0x33   :  { %525 = vmatprep.subr.bf16.mxu0 %v672_v0  ;;  %v562_v50 = vpack.c.bf16 %v158_v49, %v157_v48  ;;  %v244_v55 = vld [vmem:[#allocation8 + $0x118] sm:$0xff]  ;;  %v246_v58 = vld [vmem:[#allocation8 + $0x128] sm:$0xff]  ;;  %v247_v60 = vld [vmem:[#allocation8 + $0x130] sm:$0xff] }
  0x34   :  { %548 = vmatpush3.bf16.msra.mxu1 %v547_v24  ;;  %v568_v56 = vpack.c.bf16 %v244_v55, %v243_v53  ;;  %v571_v59 = vpack.c.bf16 %v246_v58, %v245_v57  ;;  %v248_v61 = vld [vmem:[#allocation8 + $0x138] sm:$0xff]  ;;  %v249_v63 = vld [vmem:[#allocation8 + $0x140] sm:$0xff]  ;;  %v251_v3 = vld [vmem:[#allocation8 + $0x150] sm:$0xff] }
  0x35   :  { %549 = vmatprep.subr.bf16.mxu1 %v672_v0  ;;  %v574_v62 = vpack.c.bf16 %v248_v61, %v247_v60  ;;  %v252_v4 = vld [vmem:[#allocation8 + $0x158] sm:$0xff]  ;;  %v253_v6 = vld [vmem:[#allocation8 + $0x160] sm:$0xff]  ;;  %v254_v7 = vld [vmem:[#allocation8 + $0x168] sm:$0xff] }
  0x36   :  { %527 = vmatpush3.bf16.msra.mxu0 %v526_v21  ;;  %v580_v5 = vpack.c.bf16 %v252_v4, %v251_v3  ;;  %v583_v8 = vpack.c.bf16 %v254_v7, %v253_v6  ;;  %v355_v9 = vld [vmem:[%s786_s3] ss:$0 sm:$0xff]  ;;  %v255_v14 = vld [vmem:[#allocation8 + $0x170] sm:$0xff]  ;;  %v357_v17 = vld [vmem:[%s786_s3 + $0x1] ss:$0 sm:$0xff] }
  0x37   :  { %528 = vmatprep.subr.bf16.mxu0 %v672_v0  ;;  %v256_v15 = vld [vmem:[#allocation8 + $0x178] sm:$0xff] }
  0x38   :  { %551 = vmatpush3.bf16.msra.mxu1 %v550_v30  ;;  %v586_v16 = vpack.c.bf16 %v256_v15, %v255_v14  ;;  %v359_v21 = vld [vmem:[%s786_s3 + $0x2] ss:$0 sm:$0xff] }
  0x39   :  { %552 = vmatprep.subr.bf16.mxu1 %v672_v0 }
  0x3a   :  { %530 = vmatpush3.bf16.msra.mxu0 %v529_v27 }
  0x3b   :  { %531 = vmatprep.subr.bf16.mxu0 %v672_v0 }
  0x3c   :  { %554 = vmatpush3.bf16.msra.mxu1 %v553_v36 }
  0x3d   :  { %555 = vmatprep.subr.bf16.mxu1 %v672_v0 }
  0x3e   :  { %533 = vmatpush3.bf16.msra.mxu0 %v532_v33 }
  0x3f   :  { %534 = vmatprep.subr.bf16.mxu0 %v672_v0 }
  0x40   :  { %557 = vmatpush3.bf16.msra.mxu1 %v556_v42 }
  0x41   :  { %558 = vmatprep.subr.bf16.mxu1 %v672_v0 }
  0x42   :  { %536 = vmatpush3.bf16.msra.mxu0 %v535_v39 }
  0x43   :  { %537 = vmatprep.subr.bf16.mxu0 %v672_v0 }
  0x44   :  { %560 = vmatpush3.bf16.msra.mxu1 %v559_v46 }
  0x45   :  { %561 = vmatprep.subr.bf16.mxu1 %v672_v0 }
  0x46   :  { %539 = vmatpush3.bf16.msra.mxu0 %v538_v45 }
  0x47   :  { %564 = vmatprep.subr.bf16.mxu0 %v672_v0 }
  0x48   :  { %563 = vmatpush3.bf16.msra.mxu1 %v562_v50 }
  0x49   :  { %444 = vmatmul.mubr.f32.vlgmr.msra.gmra.mrb[0].mxu0 %v43_v47 }
  0x4a   :  { %513 = vmatprep.mubr.msk.f32.mxu0 %vm673_vm0, %v674_v1  ;;  %566 = vmatpush3.bf16.msra.mxu0 %v565_v54  ;;  %v250_v1 = vld [vmem:[#allocation8 + $0x148] sm:$0xff] }
  0x4b   :  { %567 = vmatprep.subr.bf16.mxu0 %v672_v0  ;;  %v577_v2 = vpack.c.bf16 %v250_v1, %v249_v63 }
  0x4e   :  { %569 = vmatpush3.bf16.msra.mxu0 %v568_v56 }
  0x4f   :  { %570 = vmatprep.subr.bf16.mxu0 %v672_v0 }
  0x52   :  { %572 = vmatpush3.bf16.msra.mxu0 %v571_v59 }
  0x53   :  { %573 = vmatprep.subr.bf16.mxu0 %v672_v0 }
  0x56   :  { %575 = vmatpush3.bf16.msra.mxu0 %v574_v62 }
  0x57   :  { %576 = vmatprep.subr.bf16.mxu0 %v672_v0 }
  0x5a   :  { %578 = vmatpush3.bf16.msra.mxu0 %v577_v2 }
  0x5b   :  { %579 = vmatprep.subr.bf16.mxu0 %v672_v0 }
  0x5e   :  { %581 = vmatpush3.bf16.msra.mxu0 %v580_v5 }
  0x5f   :  { %582 = vmatprep.subr.bf16.mxu0 %v672_v0 }
  0x62   :  { %584 = vmatpush3.bf16.msra.mxu0 %v583_v8 }
  0x63   :  { %585 = vmatprep.subr.bf16.mxu0 %v672_v0 }
  0x66   :  { %587 = vmatpush3.bf16.msra.mxu0 %v586_v16 }
 0x11c   :  { %v135_v10 = vpop.f32.mrb[0].mxu0 }
 0x11d   :  { %v136_v11 = vadd.f32 %v355_v9, %v135_v10  ;;  %v445_v12 = vpop.f32.mrb[1].mxu0 }
 0x11f   :  { %v139_v13 = vmax.f32 %v136_v11, 0.0 }
 0x121   :  { %479 = vmatmul.mubr.f32.vlgmr.msra.gmra.mrb[0].mxu1 %v139_v13 }
 0x1f4   :  { %v233_v18 = vpop.f32.mrb[0].mxu1 }
 0x1f5   :  { %v234_v19 = vadd.f32 %v357_v17, %v233_v18  ;;  %v480_v0 = vpop.f32.mrb[1].mxu1 }
 0x1f7   :  { %v237_v20 = vmax.f32 %v234_v19, 0.0 }
 0x1f9   :  { %514 = vmatmul.mubr.f32.vlgmr.msra.gmra.mrb[2].mxu0 %v237_v20 }
 0x2cc   :  { %v331_v22 = vpop.f32.mrb[2].mxu0 }
 0x2cd   :  { %v332_v23 = vadd.f32 %v359_v21, %v331_v22  ;;  %v515_v24 = vpop.f32.mrb[3].mxu0 }
 0x2cf   :  { %v335_v25 = vmax.f32 %v332_v23, 0.0 }
 0x2d1   :  { %338 = vst [vmem:[#allocation10] sm:$0xff] %v335_v25 }
 0x2d2   :  { %651 = shalt.err (!%p648_p6)
}
 0x2d3   :  { %s652_s22 = scalar_lea.hbm %s787_s4, 128 }
 0x2d4   :  { %p653_p7 = scmp.ne.s32.totalorder %s787_s4, %s652_s22  ;;  %p656_p8 = scmp.lt.u32.totalorder %s652_s22, %s787_s4 }
 0x2d6   :  { %p658_p9 = pnand %p656_p8, %p653_p7 }
 0x2d8   :  { %661 = shalt.err (!%p658_p9)
}
 0x2d9   :  { %348 = dma.vmem_to_hbm [thread:$0]  %s346_s0, 128, %s787_s4, [#allocation7]  }
 0x2da   :  { %666 = dma.done.wait [#allocation7], 128  }
 0x2db   :  { %667 = vsyncadd [#allocation7], 4294967168 }
 0x2dc   :  { %352 = vsyncpa [#allocation6], 1 }
 0x2dd   :  { %353 = vsyncpa [#allocation9], 1 }
 0x2de   :  { %354 = vsyncpa [#allocation7], 1 }

</bundles_post_ra>
